<compile_context>
chip_gen: v7x
topology: tpu7x:2x2x1
jax: 0.10.0
libtpu: 0.0.40
codegen_flags: <defaults>
</compile_context>

<pallas_src>
import numpy as np
import jax
import jax.numpy as jnp
from jax import lax
from jax.experimental import pallas as pl
from jax.experimental.pallas import tpu as pltpu


# ----------------------------------------------------------------------------
# Pallas kernel: one batch element per grid step
# ----------------------------------------------------------------------------
def _single_hop_kernel(len_ref,                 # SMEM (B,) int32  (scalar prefetch)
                       kb_ref,                  # (1, N, D)
                       q_ref,                   # (1, 1, E)
                       wpq_ref,                 # (E, D)   proj_q weight, transposed
                       bpq_ref,                 # (1, D)   proj_q bias
                       wi2a_ref,                # (1, D)   inter2att weight
                       bi2a_ref,                # (1, 1)   inter2att bias
                       out_ref):                # (1, 1, D)
    b = pl.program_id(0)
    n_objs = len_ref[b]                         # scalar int32

    kb = kb_ref[0]                              # (N, D)
    q = q_ref[0]                                # (1, E)

    # proj_q = vecQuestions @ W_pq^T + b_pq              (MXU)
    proj_q = (jnp.dot(q, wpq_ref[...], preferred_element_type=jnp.float32)
              + bpq_ref[...])                   # (1, D)

    # interactions = F.normalize(kb * proj_q, dim=-1)     (eps = 1e-12)
    inter = kb * proj_q                         # (N, D)  broadcast over rows
    sq = jnp.sum(inter * inter, axis=-1, keepdims=True)   # (N, 1)
    denom = jnp.maximum(jnp.sqrt(sq), jnp.float32(1e-12))
    normed = inter / denom                      # (N, D)

    # raw_att = inter2att(interactions).squeeze(-1)  -> kept as (N, 1)
    raw = (jnp.sum(normed * wi2a_ref[...], axis=-1, keepdims=True)
           + bi2a_ref[...])                     # (N, 1)

    # apply_mask1d: positions >= imagesObjectNum -> -1e30
    idx = lax.broadcasted_iota(jnp.int32, raw.shape, 0)    # (N, 1)
    masked = jnp.where(idx >= n_objs, jnp.float32(-1e30), raw)

    # alpha_entmax(alpha=1.0) == softmax over objects
    # TODO(synk): alpha_entmax with alpha != 1 (sparse entmax) not implemented;
    #             the module default alpha=1.0 (softmax) is what's computed here.
    m = jnp.max(masked, axis=0, keepdims=True)  # (1, 1)
    e = jnp.exp(masked - m)                     # (N, 1)
    s = jnp.sum(e, axis=0, keepdims=True)       # (1, 1)
    att = e / s                                 # (N, 1)

    # x_att = att^T @ kb   (weighted sum over objects)
    out_ref[0] = jnp.sum(att * kb, axis=0, keepdims=True)  # (1, D)


# ----------------------------------------------------------------------------
# Wrapper
# ----------------------------------------------------------------------------
def single_hop_forward(kb, vec_questions, images_object_num, params):
    B, N, D = kb.shape
    E = vec_questions.shape[1]

    q3 = vec_questions.reshape(B, 1, E).astype(jnp.float32)
    lens = images_object_num.astype(jnp.int32)

    out = pl.pallas_call(
        _single_hop_kernel,
        grid_spec=pltpu.PrefetchScalarGridSpec(
            num_scalar_prefetch=1,
            grid=(B,),
            in_specs=[
                pl.BlockSpec((1, N, D), lambda b, lens: (b, 0, 0)),   # kb
                pl.BlockSpec((1, 1, E), lambda b, lens: (b, 0, 0)),   # vecQuestions
                pl.BlockSpec((E, D),    lambda b, lens: (0, 0)),      # W_pq^T
                pl.BlockSpec((1, D),    lambda b, lens: (0, 0)),      # b_pq
                pl.BlockSpec((1, D),    lambda b, lens: (0, 0)),      # w_i2a
                pl.BlockSpec((1, 1),    lambda b, lens: (0, 0)),      # b_i2a
            ],
            out_specs=pl.BlockSpec((1, 1, D), lambda b, lens: (b, 0, 0)),
        ),
        out_shape=jax.ShapeDtypeStruct((B, 1, D), jnp.float32),
        compiler_params=pltpu.CompilerParams(
            dimension_semantics=("parallel",)),
    )(lens, kb.astype(jnp.float32), q3,
      params["wpq_t"], params["bpq"], params["wi2a"], params["bi2a"])

    return out.reshape(B, D)


# ----------------------------------------------------------------------------
# Deterministic parameter init matching the custom Linear init
# ----------------------------------------------------------------------------
def init_single_hop_params(key, enc_dim, d_ctx):
    k1, k2 = jax.random.split(key)

    def u(k, shape, fan_in, fan_out):
        bound = float(np.sqrt(3.0 / ((fan_in + fan_out) / 2.0)))
        return jax.random.uniform(k, shape, jnp.float32, -bound, bound)

    w_pq = u(k1, (d_ctx, enc_dim), enc_dim, d_ctx)    # PyTorch layout (out, in)
    w_i2a = u(k2, (1, d_ctx), d_ctx, 1)

    return {
        "wpq_t": jnp.transpose(w_pq),                 # (E, D) for x @ W^T
        "bpq": jnp.zeros((1, d_ctx), jnp.float32),
        "wi2a": w_i2a,                                # (1, D)
        "bi2a": jnp.zeros((1, 1), jnp.float32),
    }


# ----------------------------------------------------------------------------
# Pure-JAX reference for verification
# ----------------------------------------------------------------------------
def single_hop_reference(kb, vec_q, num_objs, params):
    B, N, D = kb.shape
    proj_q = vec_q @ params["wpq_t"] + params["bpq"]              # (B, D)
    inter = kb * proj_q[:, None, :]                               # (B, N, D)
    nrm = jnp.sqrt(jnp.sum(inter * inter, axis=-1, keepdims=True))
    normed = inter / jnp.maximum(nrm, 1e-12)
    raw = jnp.sum(normed * params["wi2a"][None, :, :], axis=-1) + params["bi2a"][0, 0]
    idx = jnp.arange(N)[None, :]
    masked = jnp.where(idx >= num_objs[:, None], -1e30, raw)
    att = jax.nn.softmax(masked, axis=-1)
    return jnp.einsum("bn,bnd->bd", att, kb)


if __name__ == "__main__":
    B, N = 2, 16                 # batch, number of objects
    enc_dim, d_ctx = 32, 128     # question encoding dim, kb context dim

    key = jax.random.PRNGKey(0)
    k_p, k_kb, k_q = jax.random.split(key, 3)

    params = init_single_hop_params(k_p, enc_dim, d_ctx)
    kb = jax.random.normal(k_kb, (B, N, d_ctx), jnp.float32)
    vec_questions = jax.random.normal(k_q, (B, enc_dim), jnp.float32)
    images_object_num = jnp.array([16, 9], dtype=jnp.int32)

    x_att = single_hop_forward(kb, vec_questions, images_object_num, params)
    x_att = jax.block_until_ready(x_att)

    ref = single_hop_reference(kb, vec_questions, images_object_num, params)
    np.testing.assert_allclose(np.asarray(x_att), np.asarray(ref),
                               rtol=1e-3, atol=1e-3)

    assert x_att.shape == (B, d_ctx)
    print("KERNEL_OK")
</pallas_src>

<mosaic_0001>
module attributes {stable_mosaic.version = 11 : i64} {
  func.func @_single_hop_kernel(%arg0: i32, %arg1: memref<2xi32, #tpu.memory_space<smem>>, %arg2: memref<1x16x128xf32, #tpu.memory_space<vmem>>, %arg3: memref<1x1x32xf32, #tpu.memory_space<vmem>>, %arg4: memref<32x128xf32, #tpu.memory_space<vmem>>, %arg5: memref<1x128xf32, #tpu.memory_space<vmem>>, %arg6: memref<1x128xf32, #tpu.memory_space<vmem>>, %arg7: memref<1x1xf32, #tpu.memory_space<vmem>>, %arg8: memref<1x1x128xf32, #tpu.memory_space<vmem>>) attributes {dimension_semantics = [#tpu.dimension_semantics<parallel>], iteration_bounds = array<i64: 2>, scalar_prefetch = 1 : i64, scratch_operands = 0 : i64, tpu.core_type = #tpu.core_type<tc>, window_params = [{transform_indices = @transform_0, window_bounds = array<i64: 1, 16, 128>}, {transform_indices = @transform_1, window_bounds = array<i64: 1, 1, 32>}, {pipeline_mode = #tpu.pipeline_mode<synchronous>, transform_indices = @transform_2, window_bounds = array<i64: 32, 128>}, {pipeline_mode = #tpu.pipeline_mode<synchronous>, transform_indices = @transform_3, window_bounds = array<i64: 1, 128>}, {pipeline_mode = #tpu.pipeline_mode<synchronous>, transform_indices = @transform_4, window_bounds = array<i64: 1, 128>}, {pipeline_mode = #tpu.pipeline_mode<synchronous>, transform_indices = @transform_5, window_bounds = array<i64: 1, 1>}, {transform_indices = @transform_6, window_bounds = array<i64: 1, 1, 128>}]} {
    %0 = arith.index_cast %arg0 : i32 to index
    %1 = memref.load %arg1[%0] : memref<2xi32, #tpu.memory_space<smem>>
    %c0 = arith.constant 0 : index
    %c0_0 = arith.constant 0 : index
    %c0_1 = arith.constant 0 : index
    %2 = vector.load %arg2[%c0, %c0_0, %c0_1] : memref<1x16x128xf32, #tpu.memory_space<vmem>>, vector<1x16x128xf32>
    %3 = vector.shape_cast %2 : vector<1x16x128xf32> to vector<16x128xf32>
    %c0_2 = arith.constant 0 : index
    %c0_3 = arith.constant 0 : index
    %c0_4 = arith.constant 0 : index
    %4 = vector.load %arg3[%c0_2, %c0_3, %c0_4] : memref<1x1x32xf32, #tpu.memory_space<vmem>>, vector<1x1x32xf32>
    %5 = vector.shape_cast %4 : vector<1x1x32xf32> to vector<1x32xf32>
    %c0_5 = arith.constant 0 : index
    %c0_6 = arith.constant 0 : index
    %6 = vector.load %arg4[%c0_5, %c0_6] : memref<32x128xf32, #tpu.memory_space<vmem>>, vector<32x128xf32>
    %cst = arith.constant dense<0.000000e+00> : vector<1x128xf32>
    %7 = tpu.matmul %5, %6, %cst {dimension_numbers = #tpu.dot_dimension_numbers<[1], [0], [0], [1], [0, 0, 1, 1], [], []>} : vector<1x32xf32>, vector<32x128xf32>, vector<1x128xf32> -> vector<1x128xf32>
    %c0_7 = arith.constant 0 : index
    %c0_8 = arith.constant 0 : index
    %8 = vector.load %arg5[%c0_7, %c0_8] : memref<1x128xf32, #tpu.memory_space<vmem>>, vector<1x128xf32>
    %9 = arith.addf %7, %8 : vector<1x128xf32>
    %10 = vector.broadcast %9 : vector<1x128xf32> to vector<16x128xf32>
    %11 = arith.mulf %3, %10 : vector<16x128xf32>
    %12 = arith.mulf %11, %11 : vector<16x128xf32>
    %cst_9 = arith.constant dense<0.000000e+00> : vector<16xf32>
    %13 = vector.multi_reduction <add>, %12, %cst_9 [1] : vector<16x128xf32> to vector<16xf32>
    %14 = vector.shape_cast %13 : vector<16xf32> to vector<16x1xf32>
    %15 = math.sqrt %14 : vector<16x1xf32>
    %cst_10 = arith.constant 9.99999996E-13 : f32
    %16 = vector.broadcast %cst_10 : f32 to vector<16x1xf32>
    %17 = arith.maximumf %15, %16 : vector<16x1xf32>
    %18 = vector.broadcast %17 : vector<16x1xf32> to vector<16x128xf32>
    %19 = arith.divf %11, %18 : vector<16x128xf32>
    %c0_11 = arith.constant 0 : index
    %c0_12 = arith.constant 0 : index
    %20 = vector.load %arg6[%c0_11, %c0_12] : memref<1x128xf32, #tpu.memory_space<vmem>>, vector<1x128xf32>
    %21 = vector.broadcast %20 : vector<1x128xf32> to vector<16x128xf32>
    %22 = arith.mulf %19, %21 : vector<16x128xf32>
    %cst_13 = arith.constant dense<0.000000e+00> : vector<16xf32>
    %23 = vector.multi_reduction <add>, %22, %cst_13 [1] : vector<16x128xf32> to vector<16xf32>
    %24 = vector.shape_cast %23 : vector<16xf32> to vector<16x1xf32>
    %c0_14 = arith.constant 0 : index
    %c0_15 = arith.constant 0 : index
    %25 = vector.load %arg7[%c0_14, %c0_15] : memref<1x1xf32, #tpu.memory_space<vmem>>, vector<1x1xf32>
    %26 = vector.broadcast %25 : vector<1x1xf32> to vector<16x1xf32>
    %27 = arith.addf %24, %26 : vector<16x1xf32>
    %28 = tpu.iota {dimensions = array<i32: 0>} : vector<16x1xi32>
    %29 = vector.broadcast %1 : i32 to vector<16x1xi32>
    %30 = arith.cmpi sge, %28, %29 : vector<16x1xi32>
    %cst_16 = arith.constant -1.000000e+30 : f32
    %31 = vector.broadcast %cst_16 : f32 to vector<16x1xf32>
    %32 = arith.select %30, %31, %27 : vector<16x1xi1>, vector<16x1xf32>
    %cst_17 = arith.constant dense<0xFF800000> : vector<1xf32>
    %33 = vector.multi_reduction <maximumf>, %32, %cst_17 [0] : vector<16x1xf32> to vector<1xf32>
    %34 = vector.shape_cast %33 : vector<1xf32> to vector<1x1xf32>
    %35 = vector.broadcast %34 : vector<1x1xf32> to vector<16x1xf32>
    %36 = arith.subf %32, %35 : vector<16x1xf32>
    %37 = math.exp %36 : vector<16x1xf32>
    %cst_18 = arith.constant dense<0.000000e+00> : vector<1xf32>
    %38 = vector.multi_reduction <add>, %37, %cst_18 [0] : vector<16x1xf32> to vector<1xf32>
    %39 = vector.shape_cast %38 : vector<1xf32> to vector<1x1xf32>
    %40 = vector.broadcast %39 : vector<1x1xf32> to vector<16x1xf32>
    %41 = arith.divf %37, %40 : vector<16x1xf32>
    %42 = vector.broadcast %41 : vector<16x1xf32> to vector<16x128xf32>
    %43 = arith.mulf %42, %3 : vector<16x128xf32>
    %cst_19 = arith.constant dense<0.000000e+00> : vector<128xf32>
    %44 = vector.multi_reduction <add>, %43, %cst_19 [0] : vector<16x128xf32> to vector<128xf32>
    %45 = vector.shape_cast %44 : vector<128xf32> to vector<1x128xf32>
    %c0_20 = arith.constant 0 : index
    %c0_21 = arith.constant 0 : index
    %c0_22 = arith.constant 0 : index
    %46 = vector.load %arg8[%c0_20, %c0_21, %c0_22] : memref<1x1x128xf32, #tpu.memory_space<vmem>>, vector<1x1x128xf32>
    %47 = vector.shape_cast %46 : vector<1x1x128xf32> to vector<1x128xf32>
    %48 = vector.shape_cast %45 : vector<1x128xf32> to vector<1x1x128xf32>
    tpu.vector_store %arg8[%c0_20, %c0_21, %c0_22], %48 {strides = array<i32>} : memref<1x1x128xf32, #tpu.memory_space<vmem>>, vector<1x1x128xf32>,
    return
  }
  func.func @transform_0(%arg0: i32, %arg1: memref<2xi32, #tpu.memory_space<smem>>) -> (i32, i32, i32) {
    %c0_i32 = arith.constant 0 : i32
    %c0_i32_0 = arith.constant 0 : i32
    %c0_i32_1 = arith.constant 0 : i32
    return %arg0, %c0_i32, %c0_i32_0 : i32, i32, i32
  }
  func.func @transform_1(%arg0: i32, %arg1: memref<2xi32, #tpu.memory_space<smem>>) -> (i32, i32, i32) {
    %c0_i32 = arith.constant 0 : i32
    %c0_i32_0 = arith.constant 0 : i32
    %c0_i32_1 = arith.constant 0 : i32
    return %arg0, %c0_i32, %c0_i32_0 : i32, i32, i32
  }
  func.func @transform_2(%arg0: i32, %arg1: memref<2xi32, #tpu.memory_space<smem>>) -> (i32, i32) {
    %c0_i32 = arith.constant 0 : i32
    %c0_i32_0 = arith.constant 0 : i32
    %c0_i32_1 = arith.constant 0 : i32
    return %c0_i32, %c0_i32_0 : i32, i32
  }
  func.func @transform_3(%arg0: i32, %arg1: memref<2xi32, #tpu.memory_space<smem>>) -> (i32, i32) {
    %c0_i32 = arith.constant 0 : i32
    %c0_i32_0 = arith.constant 0 : i32
    %c0_i32_1 = arith.constant 0 : i32
    return %c0_i32, %c0_i32_0 : i32, i32
  }
  func.func @transform_4(%arg0: i32, %arg1: memref<2xi32, #tpu.memory_space<smem>>) -> (i32, i32) {
    %c0_i32 = arith.constant 0 : i32
    %c0_i32_0 = arith.constant 0 : i32
    %c0_i32_1 = arith.constant 0 : i32
    return %c0_i32, %c0_i32_0 : i32, i32
  }
  func.func @transform_5(%arg0: i32, %arg1: memref<2xi32, #tpu.memory_space<smem>>) -> (i32, i32) {
    %c0_i32 = arith.constant 0 : i32
    %c0_i32_0 = arith.constant 0 : i32
    %c0_i32_1 = arith.constant 0 : i32
    return %c0_i32, %c0_i32_0 : i32, i32
  }
  func.func @transform_6(%arg0: i32, %arg1: memref<2xi32, #tpu.memory_space<smem>>) -> (i32, i32, i32) {
    %c0_i32 = arith.constant 0 : i32
    %c0_i32_0 = arith.constant 0 : i32
    %c0_i32_1 = arith.constant 0 : i32
    return %arg0, %c0_i32, %c0_i32_0 : i32, i32, i32
  }
}

</mosaic_0001>

<bundles_post_ra>
// kernel: tpu_custom_call.1
= control target key start
LH: loop header
LB: loop body
LE: loop exit
PB: predicated region body
PF: predicated region fallthrough
CT: control target
= control target key end

     0   :  { %s1151_s0 = inlined_call_operand.vmem [shape: s32[2], index: 0, kind: input, shape index: {}]   ;;  %s1152_s1 = inlined_call_operand.hbm [shape: f32[2,16,128], index: 1, kind: input, shape index: {}]   ;;  %s1153_s2 = inlined_call_operand.vmem [shape: f32[2,1,32], index: 2, kind: input, shape index: {}]   ;;  %s1154_s3 = inlined_call_operand.hbm [shape: f32[32,128], index: 3, kind: input, shape index: {}]   ;;  %s1155_s4 = inlined_call_operand.vmem [shape: f32[1,128], index: 4, kind: input, shape index: {}]   ;;  %s1156_s5 = inlined_call_operand.vmem [shape: f32[1,128], index: 5, kind: input, shape index: {}]   ;;  %s1157_s7 = inlined_call_operand.hbm [shape: f32[2,1,128], index: 7, kind: output, shape index: {}]   ;;  %s1158_s6 = inlined_call_operand.<no memory space> [shape: f32[1,1], index: 6, kind: input, shape index: {}]  }
   0x1   :  { %s12_s26 = sshll.u32 %s1151_s0, 4  ;;  %v16_v0 = vstv %s1158_s6  ;;  %s13_s26 = int_to_ptr.vmem [resolvable:$true] %s12_s26 }
   0x2   :  { %17 = vst [vmem:[#allocation4] sm:$0x1] %v16_v0  ;;  %s717_s29 = scalar_lea.vmem %s13_s26, 16  ;;  %p722_p1 = scmp.lt.s32.totalorder %s13_s26, %s13_s26 }
   0x3   :  { %p718_p0 = scmp.ne.s32.totalorder %s13_s26, %s717_s29  ;;  %p723_p2 = scmp.lt.s32.totalorder %s717_s29, %s717_s29 }
   0x5   :  { %p724_p3 = por %p723_p2, %p722_p1 }
   0x7   :  { %p725_p4 = pnand %p724_p3, %p718_p0 }
   0x9   :  { %728 = shalt.err (!%p725_p4)  }
   0xa   :  { %s861_s30 = smov [#allocation3]  }
   0xb   :  { %15 = dma.vmem_to_smem %s13_s26, 16, %s861_s30, [#allocation2] }
   0xc   :  { %831 = dma.done.wait [#allocation2], 16 }
   0xd   :  { %832 = vsyncadd [#allocation2], 4294967280 }
   0xe   :  { %19 = sfence }
   0xf   :  { %20 = vsyncpa [#allocation6], 0 }
  0x10   :  { %22 = vsyncpa [#allocation6 + $0x1], 0 }
  0x11   :  { %23 = vsyncpa [#allocation9], 0 }
  0x12   :  { %24 = vsyncpa [#allocation7], 0 }
  0x13   :  { %26 = vsyncpa [#allocation7 + $0x1], 0  ;;  %s917_s0 = smov 0   ;;  %s919_s6 = smov 0  }
  0x14   :  { %s921_s8 = smov 0   ;;  %s923_s9 = smov 0  }
  0x15 LB: > { %s938_s10 = sadd.s32 4294967295, %s859_s9   ;;  %s598_s11 = sadd.s32 4294967294, %s859_s9   ;;  %s859_s9 = sphi %s923_s9, %s1178_s9   ;;  %s855_s8 = sphi %s921_s8, %s1177_s8   ;;  %s851_s6 = sphi %s919_s6, %s1176_s6   ;;  %s847_s0 = sphi %s917_s0, %s1175_s0  }
  0x16   : > { %p52_p5 = scmp.ne.s32.totalorder %s851_s6, %s847_s0  ;;  %p1159_p6 = scmp.eq.s32.totalorder %s938_s10, 0 }
  0x17   : > { %p192_p8 = scmp.eq.s32.totalorder %s598_s11, 1  ;;  %p599_p10 = scmp.ge.s32.totalorder %s859_s9, 1 }
  0x18   : > { %p947_p9 = por %p1159_p6, %p52_p5  ;;  %p199_p12 = scmp.lt.s32.totalorder %s859_s9, 3 }
  0x19   : > { %p952_p11 = por %p192_p8, %p52_p5  ;;  %s862_s15 = smov [#allocation8]  }
  0x1a   : > { %s1162_s12 = scalar_select %p947_p9, 1, 0 }
  0x1b   : > { %s1163_s13 = scalar_select %p952_p11, 1, 0 }
  0x1c   : > { %p957_p13 = pnand %p599_p10, %p199_p12  ;;  %s211_s16 = sshll.u32 %s862_s15, 4  ;;  %s961_s16 = int_to_ptr.vmem [resolvable:$true] %s211_s16 }
  0x1d   : > { %s973_s18 = sadd.s32 1, %s859_s9   ;;  %s39_s19 = sadd.s32 1, %s855_s8 }
  0x1e   : > { %s1164_s14 = scalar_select %p957_p13, 1, 0 }
  0x1f   : > { %p645_p0 = pneg %p957_p13  ;;  %s36_s20 = ssub.s32 %s859_s9, %s973_s18 }
  0x20   : > { %s729_s23 = scalar_lea.hbm %s1154_s3, 512 }
  0x21   : > { %p968_p2 = pnand %p645_p0, %p1159_p6  ;;  %p730_p3 = scmp.ne.s32.totalorder %s1154_s3, %s729_s23 }
  0x22   : > { %p736_p10 = scmp.lt.u32.totalorder %s729_s23, %s1154_s3 }
  0x23   : > { %p731_p4 = pneg %p968_p2 }
  0x25   : > { %p732_p5 = pnand %p731_p4, %p730_p3 }
  0x27   : > { %p733_p8 = pneg %p732_p5 }
  0x29   : > { %p738_p12 = pnand %p736_p10, %p733_p8 }
  0x2b   : > { %741 = shalt.err (!%p738_p12)
}
  0x2c   : > { %s742_s28 = scalar_lea.vmem %s961_s16, 512  ;;  %p750_p7 = scmp.lt.s32.totalorder %s961_s16, %s961_s16 }
  0x2d   : > { %p743_p0 = scmp.ne.s32.totalorder %s961_s16, %s742_s28  ;;  %p751_p11 = scmp.lt.s32.totalorder %s742_s28, %s742_s28 }
  0x2f   : > { %p745_p1 = pnand %p743_p0, %p731_p4  ;;  %p752_p9 = por %p751_p11, %p750_p7 }
  0x31   : > { %p746_p6 = pneg %p745_p1 }
  0x33   : > { %p753_p13 = pnand %p752_p9, %p746_p6 }
  0x35   : > { %756 = shalt.err (!%p753_p13)
}
  0x36   : > { %s863_s29 = smov 128   ;;  %s864_s30 = smov 8  }
  0x37   : > { %648 = dma.hbm_to_vmem [thread:$0]  (!%p968_p2), %s1154_s3, 512, %s961_s16, [#allocation9], %s863_s29, %s863_s29, %s864_s30  }
  0x38   : > { %p37_p6 = scmp.eq.s32.totalorder %s36_s20, 0  ;;  %p46_p7 = scmp.ne.s32.totalorder %s855_s8, %s851_s6 }
  0x39   : > { %p47_p9 = scmp.eq.s32.totalorder %s859_s9, 0  ;;  %p658_p11 = scmp.lt.s32.totalorder %s859_s9, 2 }
  0x3a   : > { %s1007_s21 = scalar_select %p37_p6, %s855_s8, %s39_s19  }
  0x3b   : > { %p48_p13 = por %p47_p9, %p46_p7  ;;  %p1166_p1 = scmp.eq.s32.totalorder %s938_s10, 1 }
  0x3c   : > { %s234_s17 = sand.u32 1, %s855_s8   ;;  %s614_s23 = sshll.u32 %s859_s9, 8 }
  0x3d   : > { %p1011_p3 = por %p1166_p1, %p46_p7  ;;  %s602_s24 = sshll.u32 %s234_s17, 4 }
  0x3e   : > { %s1020_s27 = scalar_lea.hbm %s1152_s1, %s614_s23  ;;  %s238_s16 = scalar_lea.vmem [#allocation5], %s602_s24 }
  0x3f   : > { %s245_s19 = sshll.u32 %s238_s16, 4  ;;  %p1022_p2 = pnand %p658_p11, %p48_p13  ;;  %s1026_s19 = int_to_ptr.vmem [resolvable:$true] %s245_s19 }
  0x40   : > { %s1028_s28 = scalar_lea.sflag [#allocation6], %s234_s17  ;;  %s757_s11 = scalar_lea.hbm %s1020_s27, 256 }
  0x41   : > { %p758_p4 = scmp.ne.s32.totalorder %s1020_s27, %s757_s11  ;;  %p759_p5 = pneg %p1022_p2 }
  0x42   : > { %s762_s24 = scalar_lea.hbm %s1152_s1, 512  ;;  %p763_p12 = scmp.lt.u32.totalorder %s1020_s27, %s1152_s1 }
  0x43   : > { %p760_p8 = pnand %p759_p5, %p758_p4  ;;  %p764_p0 = scmp.lt.u32.totalorder %s762_s24, %s757_s11 }
  0x44   : > { %p766_p7 = scmp.lt.u32.totalorder %s757_s11, %s1020_s27 }
  0x45   : > { %p761_p10 = pneg %p760_p8  ;;  %p765_p6 = por %p764_p0, %p763_p12 }
  0x47   : > { %p767_p9 = por %p766_p7, %p765_p6 }
  0x49   : > { %p768_p11 = pnand %p767_p9, %p761_p10 }
  0x4b   : > { %771 = shalt.err (!%p768_p11)
}
  0x4c   : > { %s772_s17 = scalar_lea.vmem %s1026_s19, 256  ;;  %s865_s16 = smov [#allocation5]  }
  0x4d   : > { %p773_p13 = scmp.ne.s32.totalorder %s1026_s19, %s772_s17  ;;  %s777_s15 = sshll.u32 %s865_s16, 4  ;;  %s778_s15 = int_to_ptr.vmem [resolvable:$false] %s777_s15 }
  0x4e   : > { %s779_s23 = scalar_lea.vmem %s778_s15, 512  ;;  %p780_p8 = scmp.lt.s32.totalorder %s1026_s19, %s778_s15 }
  0x4f   : > { %p775_p1 = pnand %p773_p13, %p759_p5  ;;  %p781_p12 = scmp.lt.s32.totalorder %s779_s23, %s772_s17 }
  0x51   : > { %p776_p4 = pneg %p775_p1  ;;  %p782_p0 = por %p781_p12, %p780_p8 }
  0x53   : > { %p783_p6 = pnand %p782_p0, %p776_p4 }
  0x55   : > { %786 = shalt.err (!%p783_p6)
}
  0x56   : > { %652 = dma.hbm_to_vmem [thread:$0]  (!%p1022_p2), %s1020_s27, 256, %s1026_s19, %s1028_s28, %s863_s29, %s863_s29, %s864_s30  }
  0x57   : > { %p1169_p5 = scmp.ne.s32.totalorder %s1164_s14, 0 }
  0x58   : > { %s1062_s11 = sand.u32 (!%p1169_p5), 1, %s851_s6   ;;  %p1170_p10 = scmp.ne.s32.totalorder (!%p1169_p5), %s1162_s12, 0 }
  0x59   : > { %263 = sbr.rel (%p1169_p5) target bundleno = 870 (0x366), region = 44  ;;  %s606_s24 = sshll.u32 (!%p1169_p5), %s1062_s11, 4 }
  0x5a   : > { %s266_s25 = scalar_lea.sflag (!%p1169_p5), [#allocation6], %s1062_s11  ;;  %s1066_s26 = scalar_lea.vmem (!%p1169_p5), [#allocation5], %s606_s24 }
  0x60   : > { %834 = dma.done.wait (%p1170_p10), %s266_s25, 256  }
  0x61   : > { %836 = vsyncadd (%p1170_p10), %s266_s25, 4294967040  ;;  %p1171_p2 = scmp.eq.s32.totalorder %s938_s10, 0 }
  0x63   : > { %838 = dma.done.wait (%p1171_p2), [#allocation9], 512   ;;  %p1172_p7 = pmov %p1171_p2 }
  0x64   : > { %v866_v1 = vmov 0.0|0.0   ;;  %vm867_vm0 = vmmov 0   ;;  %v868_v2 = vmov 0.0   ;;  %p304_p9 = scmp.lt.s32.totalorder %s938_s10, 1  ;;  %v311_v3 = vld [vmem:[#allocation8] sm:$0xff]  ;;  %v312_v4 = vld [vmem:[#allocation8 + $0x8] sm:$0xff]  ;;  %v390_v10 = vlaneseq }
  0x65   : > { %840 = vsyncadd (%p1172_p7), [#allocation9], 4294966784  ;;  %631 = vmatprep.subr.bf16.mxu0 %v866_v1  ;;  %628 = vmatprep.mubr.msk.f32.mxu0 %vm867_vm0, %v868_v2  ;;  %v313_v5 = vld [vmem:[#allocation8 + $0x10] sm:$0xff]  ;;  %v632_v6 = vpack.c.bf16 %v312_v4, %v311_v3  ;;  %v314_v7 = vld [vmem:[#allocation8 + $0x18] sm:$0xff]  ;;  %vm316_vm1 = vcmask 261120   ;;  %v869_v45 = vmov 0  }
  0x66   : > { %s305_s14 = scalar_select %p304_p9, %s938_s10, 1  ;;  %v635_v8 = vpack.c.bf16 %v314_v7, %v313_v5  ;;  %v391_v11 = vshrl.u32 %v390_v10, 7  ;;  %v315_v12 = vld [vmem:[%s1155_s4] sm:$0x1]  ;;  %v1085_v17 = vld [vmem:[%s1066_s26] sm:$0xff]  ;;  %702 = vset.pattern.permute.xlu1 %v869_v45  ;;  %701 = vset.pattern.permute.xlu0 %v869_v45  ;;  %vm452_vm8 = vcmask 7168  }
  0x67   : > { %633 = vmatpush3.bf16.msra.mxu0 %v632_v6  ;;  %v1088_v19 = vld [vmem:[%s1066_s26 + $0x8] sm:$0xff]  ;;  %s307_s17 = sld [smem:[#allocation3 + %s938_s10]]  ;;  %s611_s16 = sshll.u32 %s938_s10, 4 }
  0x68   : > { %634 = vmatprep.subr.bf16.mxu0 %v866_v1  ;;  %s306_s30 = scalar_lea.vmem %s1153_s2, %s305_s14  ;;  %v392_v13 = vsub.s32 0, %v391_v11  ;;  %v609_v39 = vld [vmem:[%s1156_s5] ss:$0 sm:$0xff]  ;;  %v446_v49 = vadd.s32 8, %v391_v11  ;;  %s303_s15 = scalar_lea.vmem [#allocation10], %s1062_s11 }
  0x69   : > { %v310_v9 = vld [vmem:[%s306_s30] sm:$0x1]  ;;  %s513_s23 = sshll.u32 %s303_s15, 4  ;;  %s1107_s26 = scalar_lea.hbm %s1157_s7, %s611_s16  ;;  %s1109_s23 = int_to_ptr.vmem [resolvable:$true] %s513_s23 }
  0x6a   : > { %v610_v46 = vld [vmem:[#allocation4] ss:$0 sm:$0xff]  ;;  %s501_s14 = scalar_lea.sflag [#allocation7], %s1062_s11  ;;  %s787_s12 = scalar_lea.vmem %s1109_s23, 16 }
  0x6b   : > { %636 = vmatpush3.bf16.msra.mxu0 %v635_v8  ;;  %p788_p11 = scmp.ne.s32.totalorder %s1109_s23, %s787_s12  ;;  %s870_s10 = smov [#allocation10]  }
  0x6c   : > { %s791_s29 = sshll.u32 %s870_s10, 4  ;;  %s792_s29 = int_to_ptr.vmem [resolvable:$false] %s791_s29 }
  0x6d   : > { %v447_v47 = vstv %s307_s17  ;;  %p789_p13 = pnand %p788_p11, %p1011_p3  ;;  %s793_s30 = scalar_lea.vmem %s792_s29, 32 }
  0x6e   : > { %629 = vmatmul.mubr.msk.f32.vlgmr.msra.gmra.mrb[0].mxu0 %vm316_vm1, %v310_v9  ;;  %vm448_vm6 = vcmp.ge.s32.totalorder %v391_v11, %v447_v47  ;;  %vm449_vm7 = vcmp.ge.s32.totalorder %v446_v49, %v447_v47  ;;  %p794_p4 = scmp.lt.s32.totalorder %s1109_s23, %s792_s29  ;;  %p795_p8 = scmp.lt.s32.totalorder %s793_s30, %s787_s12 }
  0x6f   : > { %p790_p1 = pneg %p789_p13 }
  0x70   : > { %p796_p12 = por %p795_p8, %p794_p4 }
  0x72   : > { %p797_p0 = pnand %p796_p12, %p790_p1 }
 0x141   : > { %v386_v14 = vpop.f32.mrb[0].mxu0 }
 0x142   : > { %v387_v15 = vadd.f32 %v386_v14, %v315_v12  ;;  %v630_v16 = vpop.f32.mrb[1].mxu0 }
 0x144   : > { %v393_v18 = vrot.slane %v387_v15, %v392_v13 }
 0x146   : > { %v394_v20 = vmul.f32 %v393_v18, %v1085_v17  ;;  %v395_v22 = vmul.f32 %v393_v18, %v1088_v19 }
 0x148   : > { %v396_v21 = vmul.f32 %v394_v20, %v394_v20  ;;  %v397_v23 = vmul.f32 %v395_v22, %v395_v22 }
 0x14a   : > { %398 = vadd.xlane.f32.xlu0 %v396_v21 }
 0x14e   : > { %400 = vadd.xlane.f32.xlu0 %v397_v23 }
 0x1d7   : > { %v399_v24 = vpop.xlane.xlu0 %398 }
 0x1d8   : > { %703 = vrsqrt.f32 %v399_v24  ;;  %vm404_vm2 = vcmp.eq.f32.partialorder %v399_v24, inf  ;;  %v407_v28 = vand.u32 2147483648, %v399_v24  ;;  %vm406_vm3 = vcmp.eq.f32.partialorder %v399_v24, 0.0 }
 0x1db   : > { %v401_v25 = vpop.xlane.xlu0 %400 }
 0x1dc   : > { %705 = vrsqrt.f32 %v401_v25  ;;  %vm411_vm4 = vcmp.eq.f32.partialorder %v401_v25, inf  ;;  %v414_v34 = vand.u32 2147483648, %v401_v25  ;;  %vm413_vm5 = vcmp.eq.f32.partialorder %v401_v25, 0.0 }
 0x1e2   : > { %v704_v26 = vpop.eup %703 }
 0x1e3   : > { %v403_v27 = vmul.f32 %v704_v26, %v399_v24 }
 0x1e5   : > { %v405_v29 = vsel %vm404_vm2, %v399_v24, %v403_v27 }
 0x1e6   : > { %v706_v30 = vpop.eup %705  ;;  %v408_v31 = vsel %vm406_vm3, %v407_v28, %v405_v29 }
 0x1e7   : > { %v410_v32 = vmul.f32 %v706_v30, %v401_v25  ;;  %v416_v33 = vmax.f32 %v408_v31, 1e-12 }
 0x1e9   : > { %v412_v35 = vsel %vm411_vm4, %v401_v25, %v410_v32  ;;  %707 = vrcp.f32 %v416_v33 }
 0x1ea   : > { %v415_v36 = vsel %vm413_vm5, %v414_v34, %v412_v35 }
 0x1eb   : > { %v417_v37 = vmax.f32 %v415_v36, 1e-12 }
 0x1ed   : > { %709 = vrcp.f32 %v417_v37 }
 0x1f3   : > { %v708_v38 = vpop.eup %707 }
 0x1f4   : > { %v419_v40 = vmul.f32 %v708_v38, %v394_v20 }
 0x1f6   : > { %v429_v41 = vmul.f32 %v609_v39, %v419_v40 }
 0x1f7   : > { %v710_v42 = vpop.eup %709 }
 0x1f8   : > { %431 = vadd.xlane.f32.xlu1 %v429_v41  ;;  %v421_v43 = vmul.f32 %v710_v42, %v395_v22 }
 0x1fa   : > { %v430_v44 = vmul.f32 %v609_v39, %v421_v43 }
 0x1fc   : > { %433 = vadd.xlane.f32.xlu1 %v430_v44 }
 0x285   : > { %v432_v48 = vpop.xlane.xlu1 %431 }
 0x286   : > { %v442_v50 = vadd.f32 %v610_v46, %v432_v48 }
 0x288   : > { %v450_v52 = vsel %vm448_vm6, -1e+30, %v442_v50 }
 0x289   : > { %v434_v51 = vpop.xlane.xlu1 %433  ;;  %v453_v55 = vsel %vm452_vm8, %v450_v52, -inf }
 0x28a   : > { %v443_v53 = vadd.f32 %v610_v46, %v434_v51 }
 0x28c   : > { %v451_v54 = vsel %vm449_vm7, -1e+30, %v443_v53 }
 0x28d   : > { %v454_v56 = vsel %vm452_vm8, %v451_v54, -inf }
 0x28e   : > { %v455_v57 = vmax.f32 %v453_v55, %v454_v56 }
 0x290   : > { %v456_v58 = vrot.slane %v455_v57, 4 }
 0x292   : > { %v457_v59 = vmax.f32 %v455_v57, %v456_v58 }
 0x294   : > { %v458_v60 = vrot.slane %v457_v59, 2 }
 0x296   : > { %v459_v61 = vmax.f32 %v457_v59, %v458_v60 }
 0x298   : > { %v460_v62 = vrot.slane %v459_v61, 1 }
 0x29a   : > { %v461_v63 = vmax.f32 %v459_v61, %v460_v62 }
 0x29c   : > { %v462_v0 = vsub.f32 %v450_v52, %v461_v63  ;;  %v463_v1 = vsub.f32 %v451_v54, %v461_v63 }
 0x29e   : > { %v464_v2 = vmul.f32 1.442695, %v462_v0  ;;  %v466_v3 = vmul.f32 1.442695, %v463_v1 }
 0x2a0   : > { %711 = vpow2.f32 %v464_v2 }
 0x2a1   : > { %713 = vpow2.f32 %v466_v3 }
 0x2aa   : > { %v712_v4 = vpop.eup %711 }
 0x2ab   : > { %v714_v5 = vpop.eup %713  ;;  %v468_v6 = vsel %vm452_vm8, %v712_v4, 0.0 }
 0x2ac   : > { %v469_v7 = vsel %vm452_vm8, %v714_v5, 0.0 }
 0x2ad   : > { %v470_v8 = vadd.f32 %v469_v7, %v468_v6 }
 0x2af   : > { %v471_v9 = vrot.slane %v470_v8, 4 }
 0x2b1   : > { %v472_v10 = vadd.f32 %v471_v9, %v470_v8 }
 0x2b3   : > { %v473_v11 = vrot.slane %v472_v10, 2 }
 0x2b5   : > { %v474_v12 = vadd.f32 %v473_v11, %v472_v10 }
 0x2b7   : > { %v475_v13 = vrot.slane %v474_v12, 1 }
 0x2b9   : > { %v476_v14 = vadd.f32 %v475_v13, %v474_v12 }
 0x2bb   : > { %715 = vrcp.f32 %v476_v14 }
 0x2c5   : > { %v716_v15 = vpop.eup %715 }
 0x2c6   : > { %v479_v16 = vmul.f32 %v716_v15, %v714_v5  ;;  %v478_v18 = vmul.f32 %v716_v15, %v712_v4 }
 0x2c8   : > { %487 = vperm.xlu1 %702, %v479_v16   ;;  %482 = vperm.xlu0 %701, %v478_v18  }
 0x347   : > { %v488_v20 = vpop.permute.xlu1 %487  ;;  %v483_v21 = vpop.permute.xlu0 %482 }
 0x348   : > { %v491_v22 = vmul.f32 %v488_v20, %v1088_v19  ;;  %v490_v23 = vmul.f32 %v483_v21, %v1085_v17 }
 0x34a   : > { %v492_v24 = vadd.f32 %v491_v22, %v490_v23 }
 0x34c   : > { %v493_v25 = vrot.slane %v492_v24, 4 }
 0x34e   : > { %v494_v26 = vadd.f32 %v493_v25, %v492_v24 }
 0x350   : > { %v495_v27 = vrot.slane %v494_v26, 2 }
 0x352   : > { %v496_v28 = vadd.f32 %v495_v27, %v494_v26 }
 0x354   : > { %v497_v29 = vrot.slane %v496_v28, 1 }
 0x356   : > { %v498_v30 = vadd.f32 %v497_v29, %v496_v28 }
 0x358   : > { %499 = vst [vmem:[%s303_s15] sm:$0x1] %v498_v30 }
 0x359   : > { %800 = shalt.err (!%p797_p0)
}
 0x35a   : > { %s801_s11 = scalar_lea.hbm %s1107_s26, 16  ;;  %s805_s20 = scalar_lea.hbm %s1157_s7, 32 }
 0x35b   : > { %p802_p6 = scmp.ne.s32.totalorder %s1107_s26, %s801_s11  ;;  %p806_p2 = scmp.lt.u32.totalorder %s1107_s26, %s1157_s7 }
 0x35c   : > { %p807_p7 = scmp.lt.u32.totalorder %s805_s20, %s801_s11  ;;  %p809_p11 = scmp.lt.u32.totalorder %s801_s11, %s1107_s26 }
 0x35d   : > { %p803_p5 = pnand %p802_p6, %p1011_p3 }
 0x35e   : > { %p808_p9 = por %p807_p7, %p806_p2 }
 0x35f   : > { %p804_p10 = pneg %p803_p5 }
 0x360   : > { %p810_p13 = por %p809_p11, %p808_p9 }
 0x362   : > { %p811_p1 = pnand %p810_p13, %p804_p10 }
 0x364   : > { %814 = shalt.err (!%p811_p1)
}
 0x365   : > { %643 = dma.vmem_to_hbm [thread:$0]  (%p1011_p3), %s1109_s23, 16, %s1107_s26, %s501_s14  }
 0x366 PF: > { %s525_s16 = sand.u32 1, %s847_s0   ;;  %p1173_p4 = scmp.ne.s32.totalorder %s1163_s13, 0 }
 0x367   : > { %p1174_p8 = scmp.ge.s32.totalorder %s859_s9, 2  ;;  %s526_s15 = scalar_lea.sflag [#allocation7], %s525_s16 }
 0x369   : > { %p654_p12 = pnand %p1174_p8, %p1173_p4 }
 0x36b   : > { %842 = dma.done.wait (!%p654_p12), %s526_s15, 16  }
 0x36c   : > { %844 = vsyncadd (!%p654_p12), %s526_s15, 4294967280  ;;  %p29_p0 = scmp.ge.s32.totalorder %s973_s18, 4   ;;  %s1175_s0 = smov %s851_s6 }
 0x36d   : > { %s1176_s6 = smov %s855_s8  ;;  %s1177_s8 = smov %s1007_s21 }
 0x36e   : > { %s1178_s9 = smov %s973_s18  ;;  %31 = sbr.rel (!%p29_p0) target bundleno = 21 (0x15), region = 96 }
 0x375   :  { %530 = vsyncpa [#allocation6], 1 }
 0x376   :  { %532 = vsyncpa [#allocation6 + $0x1], 1 }
 0x377   :  { %533 = vsyncpa [#allocation9], 1 }
 0x378   :  { %534 = vsyncpa [#allocation7], 1 }
 0x379   :  { %536 = vsyncpa [#allocation7 + $0x1], 1 }

</bundles_post_ra>
